<compile_context>
chip_gen: v6e
topology: v6e:2x2x1
jax: 0.10.0
libtpu: 0.0.40
codegen_flags: <defaults>
</compile_context>

<pallas_src>
import jax
import jax.numpy as jnp
from jax.experimental import pallas as pl
from jax.experimental.pallas import tpu as pltpu

EMB_SIZE = 256
OUT_SIZE = 2        # IMDB sentiment: binary classification head
OUT_PAD = 128       # lane-padded weight width (MXU-friendly matmul N)
GRIDLESS_MAX_B = 512  # single un-tiled VMEM block below this batch size


def linear_kernel(x_ref, wt_ref, b_ref, o_ref):
    # x_ref: (TB, EMB)  wt_ref: (EMB, OUT_PAD)  b_ref: (1, OUT_PAD)
    # o_ref: (TB, OUT_SIZE)  -- only the true logit lanes are written back.
    acc = jnp.dot(x_ref[...], wt_ref[...], preferred_element_type=jnp.float32)
    res = acc + b_ref[...]
    o_ref[...] = res[:, : o_ref.shape[-1]].astype(o_ref.dtype)


def prepare_params(weight, bias, out_pad=OUT_PAD):
    """One-time layout prep (call at init, NOT per forward).

    weight: (out, emb) PyTorch layout -> transposed + zero-padded to (emb, OP)
    bias:   (out,)                     -> zero-padded to (1, OP)
    """
    O, E = weight.shape
    OP = ((O + out_pad - 1) // out_pad) * out_pad
    wt_pad = jnp.zeros((E, OP), weight.dtype).at[:, :O].set(weight.T)
    b_pad = jnp.zeros((1, OP), bias.dtype).at[0, :O].set(bias)
    return wt_pad, b_pad


def _cost_estimate(B, E, OP, out_size):
    return pl.CostEstimate(
        flops=2 * B * E * OP,
        bytes_accessed=B * E * 4 + E * OP * 4 + OP * 4 + B * out_size * 4,
        transcendentals=0,
    )


def _choose_block_b(B, block_b):
    # Ensure >= 2 batch blocks so dimension_semantics=("parallel",) can shard
    # across both TensorCores on v7x; round the half-batch up to a multiple
    # of 8 (sublane alignment). Harmless on single-TC v5e/v6e.
    half = -(-B // 2)            # ceil(B / 2)
    half = -(-half // 8) * 8     # round up to multiple of 8
    return max(8, min(block_b, half))


def lnet_forward(x, wt_pad, b_pad, out_size=OUT_SIZE, block_b=2048):
    """y = x @ W.T + b  (Pallas equivalent of nn.Linear forward).

    x:      (B, emb) float32
    wt_pad: (emb, OP) float32  (pre-transposed, lane-padded weight)
    b_pad:  (1, OP)   float32  (lane-padded bias)
    returns (B, out_size) float32 logits.
    """
    B, E = x.shape
    OP = wt_pad.shape[1]
    cost = _cost_estimate(B, E, OP, out_size)

    if B <= GRIDLESS_MAX_B:
        # Single full-array block, no grid: zero pipeline bookkeeping.
        return pl.pallas_call(
            linear_kernel,
            out_shape=jax.ShapeDtypeStruct((B, out_size), x.dtype),
            in_specs=[
                pl.BlockSpec(memory_space=pltpu.MemorySpace.VMEM),
                pl.BlockSpec(memory_space=pltpu.MemorySpace.VMEM),
                pl.BlockSpec(memory_space=pltpu.MemorySpace.VMEM),
            ],
            out_specs=pl.BlockSpec(memory_space=pltpu.MemorySpace.VMEM),
            cost_estimate=cost,
        )(x, wt_pad, b_pad)

    # Batch-tiled path: pipeline x-row DMA against the matmul; weight/bias stay
    # VMEM-resident (constant block index across the batch axis). The boundary
    # block (B % tb != 0) is masked by Pallas -- no jnp.pad copy of x.
    tb = _choose_block_b(B, block_b)
    num_blocks = pl.cdiv(B, tb)

    return pl.pallas_call(
        linear_kernel,
        out_shape=jax.ShapeDtypeStruct((B, out_size), x.dtype),
        grid_spec=pl.GridSpec(
            grid=(num_blocks,),
            in_specs=[
                pl.BlockSpec((tb, E), lambda i: (i, 0)),
                pl.BlockSpec((E, OP), lambda i: (0, 0)),   # resident weight
                pl.BlockSpec((1, OP), lambda i: (0, 0)),   # resident bias
            ],
            out_specs=pl.BlockSpec((tb, out_size), lambda i: (i, 0)),
        ),
        compiler_params=pltpu.CompilerParams(
            dimension_semantics=("parallel",)),  # shards over 2 TCs on v7x
        cost_estimate=cost,
    )(x, wt_pad, b_pad)


def init_params(key, emb_size, out_size):
    # Deterministic init mimicking torch.nn.Linear default:
    # uniform(-1/sqrt(fan_in), 1/sqrt(fan_in)) for both weight and bias.
    kw, kb = jax.random.split(key)
    bound = 1.0 / jnp.sqrt(jnp.float32(emb_size))
    weight = jax.random.uniform(kw, (out_size, emb_size), jnp.float32,
                                minval=-bound, maxval=bound)
    bias = jax.random.uniform(kb, (out_size,), jnp.float32,
                              minval=-bound, maxval=bound)
    return weight, bias


if __name__ == "__main__":
    key = jax.random.PRNGKey(0)
    kx, kx2, kp = jax.random.split(key, 3)

    weight, bias = init_params(kp, EMB_SIZE, OUT_SIZE)
    wt_pad, b_pad = prepare_params(weight, bias)   # one-time layout prep

    # Small batch: gridless single-block path.
    batch = 8
    x = jax.random.normal(kx, (batch, EMB_SIZE), jnp.float32)
    y = lnet_forward(x, wt_pad, b_pad)
    jax.block_until_ready(y)
    y_ref = x @ weight.T + bias
    assert y.shape == (batch, OUT_SIZE)
    assert jnp.allclose(y, y_ref, atol=1e-5, rtol=1e-5)

    # Larger, non-divisible batch: exercises the batch-tiled grid path with a
    # >= 2-block "parallel" grid and a masked partial boundary block.
    batch2 = 600
    x2 = jax.random.normal(kx2, (batch2, EMB_SIZE), jnp.float32)
    y2 = lnet_forward(x2, wt_pad, b_pad)
    jax.block_until_ready(y2)
    y2_ref = x2 @ weight.T + bias
    assert y2.shape == (batch2, OUT_SIZE)
    assert jnp.allclose(y2, y2_ref, atol=1e-5, rtol=1e-5)

    print("KERNEL_OK")
</pallas_src>

<mosaic_0001>
module attributes {stable_mosaic.version = 11 : i64} {
  func.func @linear_kernel(%arg0: memref<8x256xf32, #tpu.memory_space<vmem>>, %arg1: memref<256x128xf32, #tpu.memory_space<vmem>>, %arg2: memref<1x128xf32, #tpu.memory_space<vmem>>, %arg3: memref<8x2xf32, #tpu.memory_space<vmem>>) attributes {dimension_semantics = [], scalar_prefetch = 0 : i64, scratch_operands = 0 : i64, tpu.core_type = #tpu.core_type<tc>} {
    %c0 = arith.constant 0 : index
    %c0_0 = arith.constant 0 : index
    %0 = vector.load %arg0[%c0, %c0_0] : memref<8x256xf32, #tpu.memory_space<vmem>>, vector<8x256xf32>
    %c0_1 = arith.constant 0 : index
    %c0_2 = arith.constant 0 : index
    %1 = vector.load %arg1[%c0_1, %c0_2] : memref<256x128xf32, #tpu.memory_space<vmem>>, vector<256x128xf32>
    %cst = arith.constant dense<0.000000e+00> : vector<8x128xf32>
    %2 = tpu.matmul %0, %1, %cst {dimension_numbers = #tpu.dot_dimension_numbers<[1], [0], [0], [1], [0, 0, 1, 1], [], []>} : vector<8x256xf32>, vector<256x128xf32>, vector<8x128xf32> -> vector<8x128xf32>
    %c0_3 = arith.constant 0 : index
    %c0_4 = arith.constant 0 : index
    %3 = vector.load %arg2[%c0_3, %c0_4] : memref<1x128xf32, #tpu.memory_space<vmem>>, vector<1x128xf32>
    %4 = vector.broadcast %3 : vector<1x128xf32> to vector<8x128xf32>
    %5 = arith.addf %2, %4 : vector<8x128xf32>
    %6 = vector.extract_strided_slice %5 {offsets = [0, 0], sizes = [8, 2], strides = [1, 1]} : vector<8x128xf32> to vector<8x2xf32>
    %c0_5 = arith.constant 0 : index
    %c0_6 = arith.constant 0 : index
    %7 = vector.load %arg3[%c0_5, %c0_6] : memref<8x2xf32, #tpu.memory_space<vmem>>, vector<8x2xf32>
    tpu.vector_store %arg3[%c0_5, %c0_6], %6 {strides = array<i32>} : memref<8x2xf32, #tpu.memory_space<vmem>>, vector<8x2xf32>,
    return
  }
}

</mosaic_0001>

<bundles_post_ra>
// kernel: tpu_custom_call.1
= control target key start
LH: loop header
LB: loop body
LE: loop exit
PB: predicated region body
PF: predicated region fallthrough
CT: control target
= control target key end

     0   :  { %8 = vsyncpa [#allocation3], 0  ;;  %s279_s0 = inlined_call_operand.hbm [shape: f32[8,256], index: 0, kind: input, shape index: {}]   ;;  %s280_s1 = inlined_call_operand.hbm [shape: f32[256,128], index: 1, kind: input, shape index: {}]   ;;  %s281_s2 = inlined_call_operand.vmem [shape: f32[1,128], index: 2, kind: input, shape index: {}]   ;;  %s282_s3 = inlined_call_operand.vmem [shape: f32[8,2], index: 3, kind: output, shape index: {}]  }
   0x1   :  { %9 = vsyncpa [#allocation5], 0  ;;  %s243_s12 = smov [#allocation2]   ;;  %s244_s14 = smov [#allocation4]  }
   0x2   :  { %s16_s13 = sshll.u32 %s243_s12, 4  ;;  %s25_s15 = sshll.u32 %s244_s14, 4  ;;  %s17_s13 = int_to_ptr.vmem [resolvable:$true] %s16_s13  ;;  %s26_s15 = int_to_ptr.vmem [resolvable:$true] %s25_s15 }
   0x3   :  { %s207_s16 = scalar_lea.vmem %s17_s13, 256  ;;  %p212_p1 = scmp.lt.s32.totalorder %s17_s13, %s17_s13 }
   0x4   :  { %p208_p0 = scmp.ne.s32.totalorder %s17_s13, %s207_s16  ;;  %p213_p2 = scmp.lt.s32.totalorder %s207_s16, %s207_s16 }
   0x6   :  { %p214_p3 = por %p213_p2, %p212_p1 }
   0x8   :  { %p215_p4 = pnand %p214_p3, %p208_p0 }
   0xa   :  { %218 = shalt.err (!%p215_p4)
}
   0xb   :  { %19 = dma.hbm_to_vmem [thread:$0]  %s279_s0, 256, %s17_s13, [#allocation3]  }
   0xc   :  { %s227_s19 = scalar_lea.vmem %s26_s15, 4096  ;;  %p232_p6 = scmp.lt.s32.totalorder %s26_s15, %s26_s15 }
   0xd   :  { %p228_p5 = scmp.ne.s32.totalorder %s26_s15, %s227_s19  ;;  %p233_p7 = scmp.lt.s32.totalorder %s227_s19, %s227_s19 }
   0xf   :  { %p234_p8 = por %p233_p7, %p232_p6 }
  0x11   :  { %p235_p9 = pnand %p234_p8, %p228_p5 }
  0x13   :  { %238 = shalt.err (!%p235_p9)
}
  0x14   :  { %s245_s20 = smov 128   ;;  %s246_s21 = smov 8  }
  0x15   :  { %31 = dma.hbm_to_vmem [thread:$0]  %s280_s1, 4096, %s26_s15, [#allocation5], %s245_s20, %s245_s20, %s246_s21  }
  0x16   :  { %239 = dma.done.wait [#allocation3], 256  }
  0x17   :  { %240 = vsyncadd [#allocation3], 4294967040 }
  0x18   :  { %241 = dma.done.wait [#allocation5], 4096  }
  0x19   :  { %242 = vsyncadd [#allocation5], 4294963200  ;;  %v73_v0 = vld [vmem:[#allocation4 + $0xf8] sm:$0xff]  ;;  %v72_v2 = vld [vmem:[#allocation4 + $0xf0] sm:$0xff]  ;;  %vm151_vm0 = vcmask 15360  }
  0x1a   :  { %v57_v1 = vld [vmem:[#allocation4 + $0x78] sm:$0xff]  ;;  %160 = vmatprep.subr.mxu0 %v73_v0  ;;  %v56_v3 = vld [vmem:[#allocation4 + $0x70] sm:$0xff]  ;;  %v71_v4 = vld [vmem:[#allocation4 + $0xe8] sm:$0xff] }
  0x1b   :  { %161 = vmatpush3.msra.mxu0 %v57_v1  ;;  %v55_v5 = vld [vmem:[#allocation4 + $0x68] sm:$0xff]  ;;  %v70_v6 = vld [vmem:[#allocation4 + $0xe0] sm:$0xff]  ;;  %v69_v8 = vld [vmem:[#allocation4 + $0xd8] sm:$0xff] }
  0x1c   :  { %162 = vmatprep.subr.mxu0 %v72_v2  ;;  %v54_v7 = vld [vmem:[#allocation4 + $0x60] sm:$0xff]  ;;  %v53_v9 = vld [vmem:[#allocation4 + $0x58] sm:$0xff]  ;;  %v68_v10 = vld [vmem:[#allocation4 + $0xd0] sm:$0xff] }
  0x1d   :  { %163 = vmatpush3.msra.mxu0 %v56_v3  ;;  %v52_v11 = vld [vmem:[#allocation4 + $0x50] sm:$0xff]  ;;  %v67_v12 = vld [vmem:[#allocation4 + $0xc8] sm:$0xff]  ;;  %v41_v13 = vld [vmem:[#allocation2 + $0x8] sm:$0xff] }
  0x1e   :  { %164 = vmatprep.subr.mxu0 %v71_v4  ;;  %v51_v14 = vld [vmem:[#allocation4 + $0x48] sm:$0xff]  ;;  %145 = vmatprep.mubr.f32.mxu0 %v41_v13  ;;  %v66_v15 = vld [vmem:[#allocation4 + $0xc0] sm:$0xff]  ;;  %v65_v17 = vld [vmem:[#allocation4 + $0xb8] sm:$0xff] }
  0x1f   :  { %165 = vmatpush3.msra.mxu0 %v55_v5  ;;  %v50_v16 = vld [vmem:[#allocation4 + $0x40] sm:$0xff]  ;;  %v49_v18 = vld [vmem:[#allocation4 + $0x38] sm:$0xff]  ;;  %v64_v19 = vld [vmem:[#allocation4 + $0xb0] sm:$0xff] }
  0x20   :  { %166 = vmatprep.subr.mxu0 %v70_v6  ;;  %v48_v20 = vld [vmem:[#allocation4 + $0x30] sm:$0xff]  ;;  %v63_v21 = vld [vmem:[#allocation4 + $0xa8] sm:$0xff]  ;;  %v62_v23 = vld [vmem:[#allocation4 + $0xa0] sm:$0xff] }
  0x21   :  { %167 = vmatpush3.msra.mxu0 %v54_v7  ;;  %v47_v22 = vld [vmem:[#allocation4 + $0x28] sm:$0xff]  ;;  %v46_v24 = vld [vmem:[#allocation4 + $0x20] sm:$0xff]  ;;  %v61_v25 = vld [vmem:[#allocation4 + $0x98] sm:$0xff] }
  0x22   :  { %168 = vmatprep.subr.mxu0 %v69_v8  ;;  %v45_v26 = vld [vmem:[#allocation4 + $0x18] sm:$0xff]  ;;  %v60_v27 = vld [vmem:[#allocation4 + $0x90] sm:$0xff]  ;;  %v59_v29 = vld [vmem:[#allocation4 + $0x88] sm:$0xff] }
  0x23   :  { %169 = vmatpush3.msra.mxu0 %v53_v9  ;;  %v44_v28 = vld [vmem:[#allocation4 + $0x10] sm:$0xff]  ;;  %v43_v30 = vld [vmem:[#allocation4 + $0x8] sm:$0xff]  ;;  %v58_v31 = vld [vmem:[#allocation4 + $0x80] sm:$0xff] }
  0x24   :  { %170 = vmatprep.subr.mxu0 %v68_v10  ;;  %v42_v32 = vld [vmem:[#allocation4] sm:$0xff]  ;;  %v40_v33 = vld [vmem:[#allocation2] sm:$0xff] }
  0x25   :  { %171 = vmatpush3.msra.mxu0 %v52_v11  ;;  %v159_v35 = vld [vmem:[%s281_s2] ss:$0 sm:$0xff] }
  0x26   :  { %172 = vmatprep.subr.mxu0 %v67_v12 }
  0x27   :  { %173 = vmatpush3.msra.mxu0 %v51_v14 }
  0x28   :  { %174 = vmatprep.subr.mxu0 %v66_v15 }
  0x29   :  { %175 = vmatpush3.msra.mxu0 %v50_v16 }
  0x2a   :  { %176 = vmatprep.subr.mxu0 %v65_v17 }
  0x2b   :  { %177 = vmatpush3.msra.mxu0 %v49_v18 }
  0x2c   :  { %178 = vmatprep.subr.mxu0 %v64_v19 }
  0x2d   :  { %179 = vmatpush3.msra.mxu0 %v48_v20 }
  0x2e   :  { %180 = vmatprep.subr.mxu0 %v63_v21 }
  0x2f   :  { %181 = vmatpush3.msra.mxu0 %v47_v22 }
  0x30   :  { %182 = vmatprep.subr.mxu0 %v62_v23 }
  0x31   :  { %183 = vmatpush3.msra.mxu0 %v46_v24 }
  0x32   :  { %184 = vmatprep.subr.mxu0 %v61_v25 }
  0x33   :  { %185 = vmatpush3.msra.mxu0 %v45_v26 }
  0x34   :  { %186 = vmatprep.subr.mxu0 %v60_v27 }
  0x35   :  { %187 = vmatpush3.msra.mxu0 %v44_v28 }
  0x36   :  { %188 = vmatprep.subr.mxu0 %v59_v29 }
  0x37   :  { %189 = vmatpush3.msra.mxu0 %v43_v30 }
  0x38   :  { %190 = vmatprep.subr.mxu0 %v58_v31 }
  0x39   :  { %191 = vmatpush3.msra.mxu0 %v42_v32 }
  0x3a   :  { %146 = vmatmul.mubr.f32.vlgmr.msra.gmra.mxu0 %v40_v33 }
  0xfa   :  { %v192_v34 = vpop.f32.mrf.mxu0 }
  0xfc   :  { %v193_v36 = vpop.f32.mrf.mxu0 }
  0xfd   :  { %v194_v37 = vadd.f32 %v193_v36, %v192_v34 }
  0xff   :  { %v148_v38 = vadd.f32 %v194_v37, %v159_v35 }
 0x101   :  { %152 = vst.msk [vmem:[%s282_s3] sm:$0xff] %vm151_vm0, %v148_v38 }
 0x102   :  { %157 = vsyncpa [#allocation3], 1 }
 0x103   :  { %158 = vsyncpa [#allocation5], 1 }

</bundles_post_ra>
